<compile_context>
chip_gen: v7x
topology: tpu7x:2x2x1
jax: 0.10.0
libtpu: 0.0.40
codegen_flags: <defaults>
</compile_context>

<pallas_src>
import numpy as np
import jax
import jax.numpy as jnp
from jax.experimental import pallas as pl
from jax.experimental.pallas import tpu as pltpu


def _make_split_kernel(bounds):
    """Kernel copying static channel slices of the (nb, C, H*W) input block
    into one output ref per split. bounds[i] = (start_ch, end_ch)."""

    def kernel(x_ref, *out_refs):
        # x_ref:    (nb, C,   H*W)
        # out_refs: (nb, c_i, H*W) each; last dim lane-dense -> unmasked vst.
        for (s, e), o_ref in zip(bounds, out_refs):
            o_ref[...] = x_ref[:, s:e, :]

    return kernel


def _padded_block_bytes(nb, c, hw, itemsize):
    """VMEM footprint of one (nb, c, hw) block after (8,128) tile padding."""
    return nb * (-(-c // 8) * 8) * (-(-hw // 128) * 128) * itemsize


def _pick_batch_block(n, splits, c, hw, itemsize, budget_bytes=24 * 1024 * 1024):
    """Largest divisor of n whose double-buffered working set fits the VMEM
    budget, while keeping the grid extent >= 2 when n >= 2 (v7x megacore)."""
    max_nb = n if n < 2 else max(1, n // 2)
    nb = 1
    for d in range(1, max_nb + 1):
        if n % d != 0:
            continue
        per_step = _padded_block_bytes(d, c, hw, itemsize) + sum(
            _padded_block_bytes(d, ci, hw, itemsize) for ci in splits
        )
        if 2 * per_step <= budget_bytes:  # x2 for double buffering
            nb = d
    return nb


def split_pallas(x, splits):
    """Equivalent of Split(splits).forward(x) for NCHW input x.

    Returns a tuple of arrays, the i-th having splits[i] channels.
    """
    N, C, H, W = x.shape
    splits = [int(s) for s in splits]
    assert sum(splits) == C, "splits must sum to the channel dimension"

    HW = H * W
    offsets = np.cumsum([0] + splits)
    bounds = [(int(offsets[i]), int(offsets[i + 1])) for i in range(len(splits))]

    # Lane-dense view: H*W collapses into the lane dimension. A channel split
    # of NCHW is a pure contiguous slice of this view per batch element.
    x3 = x.reshape(N, C, HW)

    itemsize = np.dtype(x.dtype).itemsize
    nb = _pick_batch_block(N, splits, C, HW, itemsize)
    grid_n = N // nb

    kernel = _make_split_kernel(bounds)

    out_shapes = tuple(jax.ShapeDtypeStruct((N, c, HW), x.dtype) for c in splits)
    # Last two block dims (channels, H*W) equal the full array extents, so the
    # (8,128) block constraint is satisfied; the leading batch dim is folded.
    in_specs = [pl.BlockSpec((nb, C, HW), lambda n: (n, 0, 0))]
    out_specs = tuple(
        pl.BlockSpec((nb, c, HW), lambda n: (n, 0, 0)) for c in splits
    )

    outs = pl.pallas_call(
        kernel,
        grid=(grid_n,),
        in_specs=in_specs,
        out_specs=out_specs,
        out_shape=out_shapes,
        compiler_params=pltpu.CompilerParams(
            dimension_semantics=("parallel",),
            vmem_limit_bytes=32 * 1024 * 1024,
        ),
    )(x3)

    # Reshape back to NCHW (contiguous, metadata-only).
    return tuple(o.reshape(N, c, H, W) for o, c in zip(outs, splits))


if __name__ == "__main__":
    key = jax.random.PRNGKey(0)

    # Small NCHW input consistent with the module: batch=2, channels=4(=1+3), 16x16 spatial.
    splits = [1, 3]
    x = jax.random.normal(key, (2, 4, 16, 16), dtype=jnp.float32)

    outs = split_pallas(x, splits)
    outs = jax.block_until_ready(outs)

    # Reference check against plain slicing semantics of the PyTorch module.
    offsets = np.cumsum([0] + splits)
    for i, o in enumerate(outs):
        ref = x[:, int(offsets[i]):int(offsets[i + 1]), :, :]
        assert o.shape == ref.shape, (o.shape, ref.shape)
        np.testing.assert_allclose(np.asarray(o), np.asarray(ref), rtol=0, atol=0)

    print("KERNEL_OK")
</pallas_src>

<mosaic_0001>
module attributes {stable_mosaic.version = 11 : i64} {
  func.func @kernel(%arg0: i32, %arg1: memref<1x4x256xf32, #tpu.memory_space<vmem>>, %arg2: memref<1x1x256xf32, #tpu.memory_space<vmem>>, %arg3: memref<1x3x256xf32, #tpu.memory_space<vmem>>) attributes {dimension_semantics = [#tpu.dimension_semantics<parallel>], iteration_bounds = array<i64: 2>, scalar_prefetch = 0 : i64, scratch_operands = 0 : i64, tpu.core_type = #tpu.core_type<tc>, window_params = [{transform_indices = @transform_0, window_bounds = array<i64: 1, 4, 256>}, {transform_indices = @transform_1, window_bounds = array<i64: 1, 1, 256>}, {transform_indices = @transform_2, window_bounds = array<i64: 1, 3, 256>}]} {
    %c0 = arith.constant 0 : index
    %c0_0 = arith.constant 0 : index
    %c0_1 = arith.constant 0 : index
    %0 = vector.load %arg1[%c0, %c0_0, %c0_1] : memref<1x4x256xf32, #tpu.memory_space<vmem>>, vector<1x1x256xf32>
    %c0_2 = arith.constant 0 : index
    %c0_3 = arith.constant 0 : index
    %c0_4 = arith.constant 0 : index
    %1 = vector.load %arg2[%c0_2, %c0_3, %c0_4] : memref<1x1x256xf32, #tpu.memory_space<vmem>>, vector<1x1x256xf32>
    tpu.vector_store %arg2[%c0_2, %c0_3, %c0_4], %0 {strides = array<i32>} : memref<1x1x256xf32, #tpu.memory_space<vmem>>, vector<1x1x256xf32>,
    %c0_5 = arith.constant 0 : index
    %c1 = arith.constant 1 : index
    %c0_6 = arith.constant 0 : index
    %2 = vector.load %arg1[%c0_5, %c1, %c0_6] : memref<1x4x256xf32, #tpu.memory_space<vmem>>, vector<1x3x256xf32>
    %c0_7 = arith.constant 0 : index
    %c0_8 = arith.constant 0 : index
    %c0_9 = arith.constant 0 : index
    %3 = vector.load %arg3[%c0_7, %c0_8, %c0_9] : memref<1x3x256xf32, #tpu.memory_space<vmem>>, vector<1x3x256xf32>
    tpu.vector_store %arg3[%c0_7, %c0_8, %c0_9], %2 {strides = array<i32>} : memref<1x3x256xf32, #tpu.memory_space<vmem>>, vector<1x3x256xf32>,
    return
  }
  func.func @transform_0(%arg0: i32) -> (i32, i32, i32) {
    %c0_i32 = arith.constant 0 : i32
    %c0_i32_0 = arith.constant 0 : i32
    %c0_i32_1 = arith.constant 0 : i32
    return %arg0, %c0_i32, %c0_i32_0 : i32, i32, i32
  }
  func.func @transform_1(%arg0: i32) -> (i32, i32, i32) {
    %c0_i32 = arith.constant 0 : i32
    %c0_i32_0 = arith.constant 0 : i32
    %c0_i32_1 = arith.constant 0 : i32
    return %arg0, %c0_i32, %c0_i32_0 : i32, i32, i32
  }
  func.func @transform_2(%arg0: i32) -> (i32, i32, i32) {
    %c0_i32 = arith.constant 0 : i32
    %c0_i32_0 = arith.constant 0 : i32
    %c0_i32_1 = arith.constant 0 : i32
    return %arg0, %c0_i32, %c0_i32_0 : i32, i32, i32
  }
}

</mosaic_0001>

<bundles_post_ra>
// kernel: tpu_custom_call.1
= control target key start
LH: loop header
LB: loop body
LE: loop exit
PB: predicated region body
PF: predicated region fallthrough
CT: control target
= control target key end

     0   :  { %8 = vsyncpa [#allocation3], 0  ;;  %s654_s0 = inlined_call_operand.hbm [shape: f32[2,4,256], index: 0, kind: input, shape index: {}]   ;;  %s655_s1 = inlined_call_operand.hbm [shape: f32[2,1,256], index: 1, kind: output, shape index: {0}]   ;;  %s656_s2 = inlined_call_operand.vmem [shape: f32[2,3,256], index: 2, kind: output, shape index: {1}]  }
   0x1   :  { %10 = vsyncpa [#allocation3 + $0x1], 0 }
   0x2   :  { %11 = vsyncpa [#allocation4], 0 }
   0x3   :  { %13 = vsyncpa [#allocation4 + $0x1], 0  ;;  %s484_s9 = smov 0   ;;  %s486_s10 = smov 0  }
   0x4   :  { %s488_s11 = smov 0   ;;  %s490_s12 = smov 0  }
   0x5 LB: > { %s505_s13 = sadd.s32 4294967295, %s465_s12   ;;  %s303_s14 = sadd.s32 4294967294, %s465_s12   ;;  %s465_s12 = sphi %s490_s12, %s671_s12   ;;  %s461_s11 = sphi %s488_s11, %s670_s11   ;;  %s457_s10 = sphi %s486_s10, %s669_s10   ;;  %s453_s9 = sphi %s484_s9, %s668_s9  }
   0x6   : > { %s509_s15 = sadd.s32 1, %s465_s12   ;;  %s26_s16 = sadd.s32 1, %s461_s11 }
   0x7   : > { %s23_s17 = ssub.s32 %s465_s12, %s509_s15  ;;  %p33_p0 = scmp.ne.s32.totalorder %s461_s11, %s457_s10 }
   0x8   : > { %p24_p1 = scmp.eq.s32.totalorder %s23_s17, 0  ;;  %p34_p2 = scmp.eq.s32.totalorder %s465_s12, 0 }
   0x9   : > { %p39_p3 = scmp.ne.s32.totalorder %s457_s10, %s453_s9  ;;  %p40_p4 = scmp.eq.s32.totalorder %s505_s13, 0 }
   0xa   : > { %s521_s18 = scalar_select %p24_p1, %s461_s11, %s26_s16  }
   0xb   : > { %p523_p5 = por %p34_p2, %p33_p0  ;;  %p527_p6 = por %p40_p4, %p39_p3 }
   0xc   : > { %p63_p7 = scmp.eq.s32.totalorder %s505_s13, 1  ;;  %p69_p8 = scmp.eq.s32.totalorder %s303_s14, 1 }
   0xd   : > { %p335_p10 = scmp.lt.s32.totalorder %s465_s12, 2  ;;  %s115_s23 = sand.u32 1, %s461_s11  }
   0xe   : > { %p534_p11 = por %p63_p7, %p33_p0  ;;  %p538_p12 = por %p69_p8, %p39_p3 }
   0xf   : > { %s320_s24 = sshll.u32 %s465_s12, 7  ;;  %s306_s25 = sshll.u32 %s115_s23, 3 }
  0x10   : > { %s660_s21 = scalar_select %p534_p11, 1, 0 }
  0x11   : > { %s661_s22 = scalar_select %p538_p12, 1, 0 }
  0x12   : > { %s547_s28 = scalar_lea.hbm %s654_s0, %s320_s24  ;;  %s119_s29 = scalar_lea.vmem [#allocation2], %s306_s25 }
  0x13   : > { %s127_s30 = sshll.u32 %s119_s29, 4  ;;  %p551_p13 = pnand %p335_p10, %p523_p5  ;;  %s555_s30 = int_to_ptr.vmem [resolvable:$true] %s127_s30 }
  0x14   : > { %s116_s4 = scalar_lea.sflag [#allocation3], %s115_s23  ;;  %s369_s5 = scalar_lea.hbm %s547_s28, 128 }
  0x15   : > { %p370_p2 = scmp.ne.s32.totalorder %s547_s28, %s369_s5  ;;  %p371_p3 = pneg %p551_p13 }
  0x16   : > { %s374_s8 = scalar_lea.hbm %s654_s0, 256  ;;  %p375_p5 = scmp.lt.u32.totalorder %s547_s28, %s654_s0 }
  0x17   : > { %p372_p4 = pnand %p371_p3, %p370_p2  ;;  %p376_p8 = scmp.lt.u32.totalorder %s374_s8, %s369_s5 }
  0x18   : > { %p378_p9 = scmp.lt.u32.totalorder %s369_s5, %s547_s28 }
  0x19   : > { %p373_p7 = pneg %p372_p4  ;;  %p377_p10 = por %p376_p8, %p375_p5 }
  0x1b   : > { %p379_p0 = por %p378_p9, %p377_p10 }
  0x1d   : > { %p380_p1 = pnand %p379_p0, %p373_p7 }
  0x1f   : > { %383 = shalt.err (!%p380_p1)
}
  0x20   : > { %s384_s17 = scalar_lea.vmem %s555_s30, 128  ;;  %s467_s19 = smov [#allocation2]  }
  0x21   : > { %p385_p2 = scmp.ne.s32.totalorder %s555_s30, %s384_s17  ;;  %s389_s23 = sshll.u32 %s467_s19, 4  ;;  %s390_s23 = int_to_ptr.vmem [resolvable:$false] %s389_s23 }
  0x22   : > { %s391_s24 = scalar_lea.vmem %s390_s23, 256  ;;  %p392_p11 = scmp.lt.s32.totalorder %s555_s30, %s390_s23 }
  0x23   : > { %p387_p4 = pnand %p385_p2, %p371_p3  ;;  %p393_p5 = scmp.lt.s32.totalorder %s391_s24, %s384_s17 }
  0x25   : > { %p388_p12 = pneg %p387_p4  ;;  %p394_p8 = por %p393_p5, %p392_p11 }
  0x27   : > { %p395_p9 = pnand %p394_p8, %p388_p12 }
  0x29   : > { %398 = shalt.err (!%p395_p9)
}
  0x2a   : > { %330 = dma.hbm_to_vmem [thread:$0]  (!%p551_p13), %s547_s28, 128, %s555_s30, %s116_s4  }
  0x2b   : > { %p663_p0 = scmp.lt.s32.totalorder %s465_s12, 3  ;;  %p664_p1 = scmp.ge.s32.totalorder %s465_s12, 1 }
  0x2d   : > { %p133_p3 = pnand %p664_p1, %p663_p0 }
  0x2e   : > { %s589_s25 = sand.u32 (!%p133_p3), 1, %s457_s10  }
  0x2f   : > { %136 = sbr.rel (%p133_p3) target bundleno = 83 (0x53), region = 24  ;;  %s310_s26 = sshll.u32 (!%p133_p3), %s589_s25, 3 }
  0x30   : > { %s139_s27 = scalar_lea.sflag (!%p133_p3), [#allocation3], %s589_s25  ;;  %s142_s29 = scalar_lea.vmem (!%p133_p3), [#allocation2], %s310_s26 }
  0x36   : > { %444 = dma.done.wait (%p527_p6), %s139_s27, 128  }
  0x37   : > { %446 = vsyncadd (%p527_p6), %s139_s27, 4294967168  ;;  %s311_s28 = sshll.u32 %s589_s25, 1  ;;  %p168_p11 = scmp.lt.s32.totalorder %s505_s13, 1  ;;  %v174_v0 = vlaneseq  ;;  %v173_v1 = vld [vmem:[%s142_s29] ss:$4 sm:$0x3] }
  0x38   : > { %s160_s30 = scalar_lea.vmem [#allocation5], %s311_s28  ;;  %s322_s4 = sshll.u32 %s505_s13, 5  ;;  %v179_v2 = vld [vmem:[%s142_s29] sm:$0xee] }
  0x39   : > { %s205_s3 = sshll.u32 %s160_s30, 4  ;;  %s673_s13 = smov (!%p168_p11, %s505_s13), 1  ;;  %vm176_vm0 = vcmp.lt.s32.totalorder %v174_v0, 256  ;;  %v314_v3 = vrot.slane %v179_v2, 9  ;;  %s601_s3 = int_to_ptr.vmem [resolvable:$true] %s205_s3 }
  0x3a   : > { %s321_s20 = sshll.u32 %s673_s13, 3  ;;  %s606_s7 = scalar_lea.hbm %s655_s1, %s322_s4  ;;  %178 = vst.msk [vmem:[%s160_s30] sm:$0x3] %vm176_vm0, %v173_v1 }
  0x3b   : > { %s611_s16 = scalar_lea.vmem %s656_s2, %s321_s20  ;;  %s186_s17 = scalar_lea.sflag [#allocation4], %s589_s25 }
  0x3c   : > { %s399_s19 = scalar_lea.vmem %s601_s3, 32  ;;  %p665_p12 = scmp.ne.s32.totalorder %s660_s21, 0 }
  0x3d   : > { %p400_p6 = scmp.ne.s32.totalorder %s601_s3, %s399_s19  ;;  %s468_s13 = smov [#allocation5]  }
  0x3e   : > { %s403_s23 = sshll.u32 %s468_s13, 4  ;;  %s404_s23 = int_to_ptr.vmem [resolvable:$false] %s403_s23 }
  0x3f   : > { %p401_p13 = pnand %p400_p6, %p665_p12  ;;  %s405_s24 = scalar_lea.vmem %s404_s23, 64 }
  0x40   : > { %p406_p10 = scmp.lt.s32.totalorder %s601_s3, %s404_s23  ;;  %p407_p2 = scmp.lt.s32.totalorder %s405_s24, %s399_s19 }
  0x41   : > { %p402_p7 = pneg %p401_p13 }
  0x42   : > { %p408_p4 = por %p407_p2, %p406_p10 }
  0x44   : > { %p409_p5 = pnand %p408_p4, %p402_p7 }
  0x46   : > { %412 = shalt.err (!%p409_p5)
}
  0x47   : > { %s413_s25 = scalar_lea.hbm %s606_s7, 32  ;;  %s417_s29 = scalar_lea.hbm %s655_s1, 64 }
  0x48   : > { %p414_p8 = scmp.ne.s32.totalorder %s606_s7, %s413_s25  ;;  %p418_p1 = scmp.lt.u32.totalorder %s606_s7, %s655_s1 }
  0x49   : > { %p419_p3 = scmp.lt.u32.totalorder %s417_s29, %s413_s25  ;;  %p421_p6 = scmp.lt.u32.totalorder %s413_s25, %s606_s7 }
  0x4a   : > { %p415_p9 = pnand %p414_p8, %p665_p12 }
  0x4b   : > { %p420_p11 = por %p419_p3, %p418_p1 }
  0x4c   : > { %p416_p0 = pneg %p415_p9 }
  0x4d   : > { %p422_p13 = por %p421_p6, %p420_p11 }
  0x4f   : > { %p423_p7 = pnand %p422_p13, %p416_p0 }
  0x51   : > { %426 = shalt.err (!%p423_p7)
}
  0x52   : > { %325 = dma.vmem_to_hbm [thread:$0]  (%p665_p12), %s601_s3, 32, %s606_s7, %s186_s17   ;;  %184 = vst [vmem:[%s611_s16] sm:$0x77] %v314_v3 }
  0x53 PF: > { %s220_s4 = sand.u32 1, %s453_s9   ;;  %p666_p10 = scmp.ne.s32.totalorder %s661_s22, 0 }
  0x54   : > { %p667_p2 = scmp.ge.s32.totalorder %s465_s12, 2  ;;  %s221_s20 = scalar_lea.sflag [#allocation4], %s220_s4 }
  0x56   : > { %p332_p4 = pnand %p667_p2, %p666_p10 }
  0x58   : > { %448 = dma.done.wait (!%p332_p4), %s221_s20, 32  }
  0x59   : > { %450 = vsyncadd (!%p332_p4), %s221_s20, 4294967264  ;;  %p16_p5 = scmp.ge.s32.totalorder %s509_s15, 4   ;;  %s668_s9 = smov %s457_s10 }
  0x5a   : > { %s669_s10 = smov %s461_s11  ;;  %s670_s11 = smov %s521_s18 }
  0x5b   : > { %s671_s12 = smov %s509_s15  ;;  %18 = sbr.rel (!%p16_p5) target bundleno = 5 (0x5), region = 81 }
  0x62   :  { %234 = vsyncpa [#allocation3], 1 }
  0x63   :  { %236 = vsyncpa [#allocation3 + $0x1], 1 }
  0x64   :  { %237 = vsyncpa [#allocation4], 1 }
  0x65   :  { %239 = vsyncpa [#allocation4 + $0x1], 1 }

</bundles_post_ra>
